<compile_context>
chip_gen: v6e
topology: v6e:2x2x1
jax: 0.10.0
libtpu: 0.0.40
codegen_flags: <defaults>
</compile_context>

<pallas_src>
import math
import functools

import jax
import jax.numpy as jnp
from jax.experimental import pallas as pl
from jax.experimental.pallas import tpu as pltpu


def attention_kernel(x_ref, w_ref, bo_ref, o_ref, *, batch, tokens, heads,
                     dim_head):
    # x_ref : (rows, dim)                rows = batch * tokens
    # w_ref : (dim + inner, 3*inner)     bf16 packed weights:
    #           rows [0, dim)        -> W_qkv (y = x @ W), scale folded into q
    #           rows [dim, dim+inner)-> W_out, zero-padded on lanes [out_dim:)
    # bo_ref: (1, out_dim)               f32 bias
    # o_ref : (rows, out_dim)
    rows, dim = x_ref.shape
    inner = heads * dim_head
    out_dim = o_ref.shape[1]

    x = x_ref[...].astype(jnp.bfloat16)                       # (rows, dim) bf16
    w = w_ref[...]                                             # packed bf16 slab
    wqkv = w[0:dim, :]                                         # (dim, 3*inner)
    wo = w[dim:dim + inner, 0:out_dim]                         # (inner, out_dim)

    # One fused projection for q, k, v over all heads: single dense MXU push.
    qkv = jnp.dot(x, wqkv, preferred_element_type=jnp.float32)  # (rows, 3*inner)
    qkv = qkv.astype(jnp.bfloat16).reshape(batch, tokens, 3 * inner)

    o_heads = []
    for h in range(heads):                                     # static tiny loop
        q = qkv[:, :, h * dim_head:(h + 1) * dim_head]                       # (b, n, d)
        k = qkv[:, :, inner + h * dim_head: inner + (h + 1) * dim_head]      # (b, n, d)
        v = qkv[:, :, 2 * inner + h * dim_head: 2 * inner + (h + 1) * dim_head]

        # q @ k^T (scale already folded into the q weight columns)
        dots = jnp.einsum('bqd,bkd->bqk', q, k,
                          preferred_element_type=jnp.float32)  # (b, n, n) f32
        m = jnp.max(dots, axis=-1, keepdims=True)              # f32 softmax
        p = jnp.exp(dots - m)
        l = jnp.sum(p, axis=-1, keepdims=True)
        # normalize the (n, n) probs — smaller than the (n, d) output for n < d;
        # EUP reciprocal keeps this off the VALU slots
        p = p * pl.reciprocal(l, approx=True)
        o_h = jnp.einsum('bqk,bkd->bqd', p.astype(jnp.bfloat16), v,
                         preferred_element_type=jnp.float32)   # (b, n, d) f32
        o_heads.append(o_h)

    # lane-concat heads -> (b, n, inner) -> (rows, inner), single Wo dot.
    o_cat = (o_heads[0] if heads == 1
             else jnp.concatenate(o_heads, axis=-1)).reshape(rows, inner)
    out = jnp.dot(o_cat.astype(jnp.bfloat16), wo,
                  preferred_element_type=jnp.float32)          # (rows, out_dim)

    # single store of the whole slab
    o_ref[...] = (out + bo_ref[...]).astype(o_ref.dtype)


def prepare_attention_params(params, *, heads, dim_head, mxu_dtype=jnp.bfloat16):
    """One-time weight preparation (hoisted out of the per-call path).

    - transpose to y = x @ W layouts
    - fold the 1/sqrt(dim_head) softmax scale into the q columns of W_qkv
    - zero-pad W_out on the lane axis and stack it under W_qkv so the kernel
      gets ONE packed bf16 weight slab (fewer input DMAs, lane-dense layout)
    - bias stays f32
    """
    wqkv_t = jnp.asarray(params["wqkv"], jnp.float32)   # (3*inner, dim), torch (out, in)
    wout = jnp.asarray(params["wout"], jnp.float32)     # (out_dim, inner)
    bout = jnp.asarray(params["bout"], jnp.float32)     # (out_dim,)

    inner = heads * dim_head
    three_inner, dim = wqkv_t.shape
    assert three_inner == 3 * inner
    out_dim = wout.shape[0]
    scale = dim_head ** (-0.5)

    # y = x @ W layout; column order matches torch chunk(3) + '(h d)' layout:
    # [0:inner]=q, [inner:2*inner]=k, [2*inner:]=v, each head-major / d-minor.
    w_qkv = wqkv_t.T                                     # (dim, 3*inner)
    scale_cols = jnp.concatenate([jnp.full((inner,), scale, jnp.float32),
                                  jnp.ones((2 * inner,), jnp.float32)])
    w_qkv = w_qkv * scale_cols[None, :]                  # fold scale into q cols

    w_o = wout.T                                         # (inner, out_dim)
    w_o_pad = jnp.zeros((inner, 3 * inner), jnp.float32).at[:, :out_dim].set(w_o)

    w_packed = jnp.concatenate([w_qkv, w_o_pad], axis=0).astype(mxu_dtype)

    return {
        "w": w_packed,                                   # (dim + inner, 3*inner) bf16
        "bo": bout.reshape(1, out_dim).astype(jnp.float32),
    }


def attention_forward(x, coords, prepared, *, heads, dim_head):
    # coords is unused for the is_SCL=False path (matches the PyTorch forward).
    del coords
    b, n, dim = x.shape
    w, bo = prepared["w"], prepared["bo"]
    inner = heads * dim_head
    out_dim = bo.shape[1]
    assert w.shape == (dim + inner, 3 * inner)
    rows = b * n

    # flatten batch to rows in the wrapper (free layout plumbing) so the kernel
    # sees a single lane-contiguous (rows, dim) slab in and out.
    x2 = x.reshape(rows, dim)

    kernel = functools.partial(attention_kernel, batch=b, tokens=n,
                               heads=heads, dim_head=dim_head)

    out2 = pl.pallas_call(
        kernel,
        out_shape=jax.ShapeDtypeStruct((rows, out_dim), x.dtype),
        grid_spec=pltpu.PrefetchScalarGridSpec(
            num_scalar_prefetch=0,
            grid=(1,),                                   # single step, one TC
            in_specs=[
                pl.BlockSpec((rows, dim), lambda i: (0, 0)),
                pl.BlockSpec(w.shape, lambda i: (0, 0)),
                pl.BlockSpec((1, out_dim), lambda i: (0, 0)),
            ],
            out_specs=pl.BlockSpec((rows, out_dim), lambda i: (0, 0)),
        ),
        compiler_params=pltpu.CompilerParams(
            dimension_semantics=("arbitrary",)),
    )(x2, w, bo)

    return out2.reshape(b, n, out_dim)


def xavier_normal(key, shape):
    # shape = (fan_out, fan_in)  — PyTorch Linear weight convention
    fan_out, fan_in = shape
    std = math.sqrt(2.0 / (fan_in + fan_out))
    return std * jax.random.normal(key, shape, dtype=jnp.float32)


def reference_forward(x, params, *, heads, dim_head):
    # Plain-JAX f32 reference mirroring the PyTorch forward (is_SCL=False).
    b, n, dim = x.shape
    inner_dim = heads * dim_head
    scale = dim_head ** (-0.5)
    qkv = x @ params["wqkv"].T                                  # (b, n, 3*inner)
    q, k, v = jnp.split(qkv, 3, axis=-1)

    def to_heads(t):
        return t.reshape(b, n, heads, dim_head).transpose(0, 2, 1, 3)

    q, k, v = map(to_heads, (q, k, v))                          # (b, h, n, d)
    dots = jnp.einsum("bhid,bhjd->bhij", q, k) * scale
    attn = jax.nn.softmax(dots, axis=-1)
    out = jnp.einsum("bhij,bhjd->bhid", attn, v)
    out = out.transpose(0, 2, 1, 3).reshape(b, n, inner_dim)
    return out @ params["wout"].T + params["bout"]


if __name__ == "__main__":
    # Config consistent with the module: dim=32, num_patches=8, heads=2,
    # dim_head=16 -> inner_dim=32, project_out=True, dropout=0 (identity).
    B, N, DIM = 2, 8, 32
    HEADS, DIM_HEAD = 2, 16
    INNER = HEADS * DIM_HEAD

    key = jax.random.PRNGKey(0)
    kx, kqkv, kout, kb = jax.random.split(key, 4)

    x = jax.random.normal(kx, (B, N, DIM), dtype=jnp.float32)
    coords = None  # unused for is_SCL=False
    # TODO(synk): is_SCL=True path (CoordLinear + learned per-head scale +
    # diagonal -inf mask) is not implemented here.

    params = {
        "wqkv": xavier_normal(kqkv, (INNER * 3, DIM)),   # to_qkv.weight (no bias)
        "wout": xavier_normal(kout, (DIM, INNER)),       # to_out[0].weight
        "bout": 0.02 * jax.random.normal(kb, (DIM,), dtype=jnp.float32),  # to_out[0].bias
    }

    # One-time weight prep (transpose / scale fold / packing / bf16 cast)
    prepared = prepare_attention_params(params, heads=HEADS, dim_head=DIM_HEAD)

    out = attention_forward(x, coords, prepared, heads=HEADS, dim_head=DIM_HEAD)
    out = jax.block_until_ready(out)

    ref = reference_forward(x, params, heads=HEADS, dim_head=DIM_HEAD)
    assert out.shape == (B, N, DIM)
    # bf16 MXU inputs + approx reciprocal vs f32 reference -> relaxed tolerance
    max_err = float(jnp.max(jnp.abs(out - ref)))
    assert jnp.allclose(out, ref, atol=2e-2, rtol=2e-2), (
        f"mismatch vs reference (max abs err {max_err})")

    print("KERNEL_OK")
</pallas_src>

<mosaic_0001>
module attributes {stable_mosaic.version = 11 : i64} {
  func.func @attention_kernel(%arg0: i32, %arg1: memref<16x32xf32, #tpu.memory_space<vmem>>, %arg2: memref<64x96xbf16, #tpu.memory_space<vmem>>, %arg3: memref<1x32xf32, #tpu.memory_space<vmem>>, %arg4: memref<16x32xf32, #tpu.memory_space<vmem>>) attributes {dimension_semantics = [#tpu.dimension_semantics<arbitrary>], iteration_bounds = array<i64: 1>, scalar_prefetch = 0 : i64, scratch_operands = 0 : i64, tpu.core_type = #tpu.core_type<tc>, window_params = [{pipeline_mode = #tpu.pipeline_mode<synchronous>, transform_indices = @transform_0, window_bounds = array<i64: 16, 32>}, {pipeline_mode = #tpu.pipeline_mode<synchronous>, transform_indices = @transform_1, window_bounds = array<i64: 64, 96>}, {pipeline_mode = #tpu.pipeline_mode<synchronous>, transform_indices = @transform_2, window_bounds = array<i64: 1, 32>}, {pipeline_mode = #tpu.pipeline_mode<synchronous>, transform_indices = @transform_3, window_bounds = array<i64: 16, 32>}]} {
    %c0 = arith.constant 0 : index
    %c0_0 = arith.constant 0 : index
    %0 = vector.load %arg1[%c0, %c0_0] : memref<16x32xf32, #tpu.memory_space<vmem>>, vector<16x32xf32>
    %1 = arith.truncf %0 : vector<16x32xf32> to vector<16x32xbf16>
    %c0_1 = arith.constant 0 : index
    %c0_2 = arith.constant 0 : index
    %2 = vector.load %arg2[%c0_1, %c0_2] : memref<64x96xbf16, #tpu.memory_space<vmem>>, vector<64x96xbf16>
    %3 = vector.extract_strided_slice %2 {offsets = [0, 0], sizes = [32, 96], strides = [1, 1]} : vector<64x96xbf16> to vector<32x96xbf16>
    %4 = vector.extract_strided_slice %2 {offsets = [32, 0], sizes = [32, 32], strides = [1, 1]} : vector<64x96xbf16> to vector<32x32xbf16>
    %cst = arith.constant dense<0.000000e+00> : vector<16x96xf32>
    %5 = tpu.matmul %1, %3, %cst {dimension_numbers = #tpu.dot_dimension_numbers<[1], [0], [0], [1], [0, 0, 1, 1], [], []>} : vector<16x32xbf16>, vector<32x96xbf16>, vector<16x96xf32> -> vector<16x96xf32>
    %6 = arith.truncf %5 : vector<16x96xf32> to vector<16x96xbf16>
    %7 = vector.shape_cast %6 : vector<16x96xbf16> to vector<2x8x96xbf16>
    %8 = vector.extract_strided_slice %7 {offsets = [0, 0, 0], sizes = [2, 8, 16], strides = [1, 1, 1]} : vector<2x8x96xbf16> to vector<2x8x16xbf16>
    %9 = vector.extract_strided_slice %7 {offsets = [0, 0, 32], sizes = [2, 8, 16], strides = [1, 1, 1]} : vector<2x8x96xbf16> to vector<2x8x16xbf16>
    %10 = vector.extract_strided_slice %7 {offsets = [0, 0, 64], sizes = [2, 8, 16], strides = [1, 1, 1]} : vector<2x8x96xbf16> to vector<2x8x16xbf16>
    "tpu.trace_start"() <{level = 10 : i32, message = "bqd,bkd->bqk"}> : () -> ()
    %cst_3 = arith.constant dense<0.000000e+00> : vector<2x8x8xf32>
    %11 = tpu.matmul %8, %9, %cst_3 {dimension_numbers = #tpu.dot_dimension_numbers<[2], [2], [1], [1], [0, 0, 0, 1, 1, 1], [0], [0]>} : vector<2x8x16xbf16>, vector<2x8x16xbf16>, vector<2x8x8xf32> -> vector<2x8x8xf32>
    "tpu.trace_stop"() : () -> ()
    %cst_4 = arith.constant dense<0xFF800000> : vector<2x8xf32>
    %12 = vector.multi_reduction <maximumf>, %11, %cst_4 [2] : vector<2x8x8xf32> to vector<2x8xf32>
    %13 = vector.shape_cast %12 : vector<2x8xf32> to vector<2x8x1xf32>
    %14 = vector.broadcast %13 : vector<2x8x1xf32> to vector<2x8x8xf32>
    %15 = arith.subf %11, %14 : vector<2x8x8xf32>
    %16 = math.exp %15 : vector<2x8x8xf32>
    %cst_5 = arith.constant dense<0.000000e+00> : vector<2x8xf32>
    %17 = vector.multi_reduction <add>, %16, %cst_5 [2] : vector<2x8x8xf32> to vector<2x8xf32>
    %18 = vector.shape_cast %17 : vector<2x8xf32> to vector<2x8x1xf32>
    %19 = tpu.reciprocal %18 {approx = true} : vector<2x8x1xf32> -> vector<2x8x1xf32>
    %20 = vector.broadcast %19 : vector<2x8x1xf32> to vector<2x8x8xf32>
    %21 = arith.mulf %16, %20 : vector<2x8x8xf32>
    %22 = arith.truncf %21 : vector<2x8x8xf32> to vector<2x8x8xbf16>
    "tpu.trace_start"() <{level = 10 : i32, message = "bqk,bkd->bqd"}> : () -> ()
    %cst_6 = arith.constant dense<0.000000e+00> : vector<2x8x16xf32>
    %23 = tpu.matmul %22, %10, %cst_6 {dimension_numbers = #tpu.dot_dimension_numbers<[2], [1], [1], [2], [0, 0, 0, 1, 1, 2], [0], [0]>} : vector<2x8x8xbf16>, vector<2x8x16xbf16>, vector<2x8x16xf32> -> vector<2x8x16xf32>
    "tpu.trace_stop"() : () -> ()
    %24 = vector.extract_strided_slice %7 {offsets = [0, 0, 16], sizes = [2, 8, 16], strides = [1, 1, 1]} : vector<2x8x96xbf16> to vector<2x8x16xbf16>
    %25 = vector.extract_strided_slice %7 {offsets = [0, 0, 48], sizes = [2, 8, 16], strides = [1, 1, 1]} : vector<2x8x96xbf16> to vector<2x8x16xbf16>
    %26 = vector.extract_strided_slice %7 {offsets = [0, 0, 80], sizes = [2, 8, 16], strides = [1, 1, 1]} : vector<2x8x96xbf16> to vector<2x8x16xbf16>
    "tpu.trace_start"() <{level = 10 : i32, message = "bqd,bkd->bqk"}> : () -> ()
    %cst_7 = arith.constant dense<0.000000e+00> : vector<2x8x8xf32>
    %27 = tpu.matmul %24, %25, %cst_7 {dimension_numbers = #tpu.dot_dimension_numbers<[2], [2], [1], [1], [0, 0, 0, 1, 1, 1], [0], [0]>} : vector<2x8x16xbf16>, vector<2x8x16xbf16>, vector<2x8x8xf32> -> vector<2x8x8xf32>
    "tpu.trace_stop"() : () -> ()
    %cst_8 = arith.constant dense<0xFF800000> : vector<2x8xf32>
    %28 = vector.multi_reduction <maximumf>, %27, %cst_8 [2] : vector<2x8x8xf32> to vector<2x8xf32>
    %29 = vector.shape_cast %28 : vector<2x8xf32> to vector<2x8x1xf32>
    %30 = vector.broadcast %29 : vector<2x8x1xf32> to vector<2x8x8xf32>
    %31 = arith.subf %27, %30 : vector<2x8x8xf32>
    %32 = math.exp %31 : vector<2x8x8xf32>
    %cst_9 = arith.constant dense<0.000000e+00> : vector<2x8xf32>
    %33 = vector.multi_reduction <add>, %32, %cst_9 [2] : vector<2x8x8xf32> to vector<2x8xf32>
    %34 = vector.shape_cast %33 : vector<2x8xf32> to vector<2x8x1xf32>
    %35 = tpu.reciprocal %34 {approx = true} : vector<2x8x1xf32> -> vector<2x8x1xf32>
    %36 = vector.broadcast %35 : vector<2x8x1xf32> to vector<2x8x8xf32>
    %37 = arith.mulf %32, %36 : vector<2x8x8xf32>
    %38 = arith.truncf %37 : vector<2x8x8xf32> to vector<2x8x8xbf16>
    "tpu.trace_start"() <{level = 10 : i32, message = "bqk,bkd->bqd"}> : () -> ()
    %cst_10 = arith.constant dense<0.000000e+00> : vector<2x8x16xf32>
    %39 = tpu.matmul %38, %26, %cst_10 {dimension_numbers = #tpu.dot_dimension_numbers<[2], [1], [1], [2], [0, 0, 0, 1, 1, 2], [0], [0]>} : vector<2x8x8xbf16>, vector<2x8x16xbf16>, vector<2x8x16xf32> -> vector<2x8x16xf32>
    "tpu.trace_stop"() : () -> ()
    %40 = tpu.concatenate %23, %39 in 2 : vector<2x8x16xf32>, vector<2x8x16xf32> -> vector<2x8x32xf32>
    %41 = vector.shape_cast %40 : vector<2x8x32xf32> to vector<16x32xf32>
    %42 = arith.truncf %41 : vector<16x32xf32> to vector<16x32xbf16>
    %cst_11 = arith.constant dense<0.000000e+00> : vector<16x32xf32>
    %43 = tpu.matmul %42, %4, %cst_11 {dimension_numbers = #tpu.dot_dimension_numbers<[1], [0], [0], [1], [0, 0, 1, 1], [], []>} : vector<16x32xbf16>, vector<32x32xbf16>, vector<16x32xf32> -> vector<16x32xf32>
    %c0_12 = arith.constant 0 : index
    %c0_13 = arith.constant 0 : index
    %44 = vector.load %arg3[%c0_12, %c0_13] : memref<1x32xf32, #tpu.memory_space<vmem>>, vector<1x32xf32>
    %45 = vector.broadcast %44 : vector<1x32xf32> to vector<16x32xf32>
    %46 = arith.addf %43, %45 : vector<16x32xf32>
    %c0_14 = arith.constant 0 : index
    %c0_15 = arith.constant 0 : index
    %47 = vector.load %arg4[%c0_14, %c0_15] : memref<16x32xf32, #tpu.memory_space<vmem>>, vector<16x32xf32>
    tpu.vector_store %arg4[%c0_14, %c0_15], %46 {strides = array<i32>} : memref<16x32xf32, #tpu.memory_space<vmem>>, vector<16x32xf32>,
    return
  }
  func.func @transform_0(%arg0: i32) -> (i32, i32) {
    %c0_i32 = arith.constant 0 : i32
    %c0_i32_0 = arith.constant 0 : i32
    %c0_i32_1 = arith.constant 0 : i32
    return %c0_i32, %c0_i32_0 : i32, i32
  }
  func.func @transform_1(%arg0: i32) -> (i32, i32) {
    %c0_i32 = arith.constant 0 : i32
    %c0_i32_0 = arith.constant 0 : i32
    %c0_i32_1 = arith.constant 0 : i32
    return %c0_i32, %c0_i32_0 : i32, i32
  }
  func.func @transform_2(%arg0: i32) -> (i32, i32) {
    %c0_i32 = arith.constant 0 : i32
    %c0_i32_0 = arith.constant 0 : i32
    %c0_i32_1 = arith.constant 0 : i32
    return %c0_i32, %c0_i32_0 : i32, i32
  }
  func.func @transform_3(%arg0: i32) -> (i32, i32) {
    %c0_i32 = arith.constant 0 : i32
    %c0_i32_0 = arith.constant 0 : i32
    %c0_i32_1 = arith.constant 0 : i32
    return %c0_i32, %c0_i32_0 : i32, i32
  }
}

</mosaic_0001>

<bundles_post_ra>
// kernel: tpu_custom_call.1
= control target key start
LH: loop header
LB: loop body
LE: loop exit
PB: predicated region body
PF: predicated region fallthrough
CT: control target
= control target key end

     0   :  { %8 = vsyncpa [#allocation3], 0  ;;  %s1001_s0 = inlined_call_operand.hbm [shape: f32[16,32], index: 0, kind: input, shape index: {}]   ;;  %s1002_s1 = inlined_call_operand.hbm [shape: bf16[64,96], index: 1, kind: input, shape index: {}]   ;;  %s1003_s2 = inlined_call_operand.vmem [shape: f32[1,32], index: 2, kind: input, shape index: {}]   ;;  %s1004_s3 = inlined_call_operand.hbm [shape: f32[16,32], index: 3, kind: output, shape index: {}]  }
   0x1   :  { %9 = vsyncpa [#allocation6], 0 }
   0x2   :  { %10 = vsyncpa [#allocation4], 0  ;;  %s861_s12 = smov [#allocation2]  }
   0x3   :  { %s16_s13 = sshll.u32 %s861_s12, 4  ;;  %s17_s13 = int_to_ptr.vmem [resolvable:$true] %s16_s13 }
   0x4   :  { %s803_s14 = scalar_lea.vmem %s17_s13, 256  ;;  %p808_p1 = scmp.lt.s32.totalorder %s17_s13, %s17_s13 }
   0x5   :  { %p804_p0 = scmp.ne.s32.totalorder %s17_s13, %s803_s14  ;;  %p809_p2 = scmp.lt.s32.totalorder %s803_s14, %s803_s14 }
   0x7   :  { %p810_p3 = por %p809_p2, %p808_p1 }
   0x9   :  { %p811_p4 = pnand %p810_p3, %p804_p0 }
   0xb   :  { %814 = shalt.err (!%p811_p4)
}
   0xc   :  { %s862_s15 = smov 128   ;;  %s863_s16 = smov 8  }
   0xd   :  { %22 = dma.hbm_to_vmem [thread:$0]  %s1001_s0, 256, %s17_s13, [#allocation3], %s862_s15, %s862_s15, %s863_s16  }
   0xe   :  { %s864_s19 = smov [#allocation5]  }
   0xf   :  { %s28_s20 = sshll.u32 %s864_s19, 4  ;;  %s29_s20 = int_to_ptr.vmem [resolvable:$true] %s28_s20 }
  0x10   :  { %s823_s21 = scalar_lea.vmem %s29_s20, 512  ;;  %p828_p6 = scmp.lt.s32.totalorder %s29_s20, %s29_s20 }
  0x11   :  { %p824_p5 = scmp.ne.s32.totalorder %s29_s20, %s823_s21  ;;  %p829_p7 = scmp.lt.s32.totalorder %s823_s21, %s823_s21 }
  0x13   :  { %p830_p8 = por %p829_p7, %p828_p6 }
  0x15   :  { %p831_p9 = pnand %p830_p8, %p824_p5 }
  0x17   :  { %834 = shalt.err (!%p831_p9)
}
  0x18   :  { %s865_s22 = smov 64   ;;  %s866_s23 = smov 4  }
  0x19   :  { %34 = dma.hbm_to_vmem [thread:$0]  %s1002_s1, 512, %s29_s20, [#allocation6], %s865_s22, %s865_s22, %s866_s23  }
  0x1a   :  { %855 = dma.done.wait [#allocation3], 256  }
  0x1b   :  { %856 = vsyncadd [#allocation3], 4294967040 }
  0x1c   :  { %857 = dma.done.wait [#allocation6], 512  }
  0x1d   :  { %858 = vsyncadd [#allocation6], 4294966784  ;;  %v867_v0 = vmov 0.0   ;;  %vm868_vm0 = vmmov 0   ;;  %v775_v1 = vld [vmem:[#allocation5 + $0x8] sm:$0xff]   ;;  %v776_v2 = vld [vmem:[#allocation5] sm:$0xff]  }
  0x1e   :  { %692 = vmatprep.subr.bf16.mxu0 %v867_v0  ;;  %696 = vmatprep.mubr.msk.bf16.mxu0 %vm868_vm0, %v867_v0  ;;  %v44_v3 = vld [vmem:[#allocation2] sm:$0xff]  ;;  %v45_v4 = vld [vmem:[#allocation2 + $0x8] sm:$0xff]  ;;  %vm67_vm1 = vcmask 261120   ;;  %s869_s0 = smov 96   ;;  %vm120_vm2 = vcmask 130048   ;;  %vm215_vm3 = vcmask 64512  }
  0x1f   :  { %700 = vmatprep.subr.bf16.mxu1 %v867_v0  ;;  %702 = vmatprep.mubr.msk.bf16.mxu1 %vm868_vm0, %v867_v0  ;;  %v46_v5 = vpack.c.bf16 %v45_v4, %v44_v3  ;;  %s870_s1 = smov 80   ;;  %vm245_vm4 = vcmask 1043456   ;;  %s871_s26 = smov 112  }
  0x20   :  { %693 = vmatpush3.bf16.msra.mxu0 %v775_v1  ;;  %s872_s27 = smov 48   ;;  %s873_s28 = smov 16  }
  0x21   :  { %694 = vmatprep.subr.bf16.mxu0 %v867_v0  ;;  %s874_s4 = smov [#allocation7]  }
  0x22   :  { %s638_s5 = sshll.u32 %s874_s4, 4  ;;  %s639_s5 = int_to_ptr.vmem [resolvable:$true] %s638_s5 }
  0x23   :  { %s835_s6 = scalar_lea.vmem %s639_s5, 256  ;;  %p840_p11 = scmp.lt.s32.totalorder %s639_s5, %s639_s5 }
  0x24   :  { %695 = vmatpush3.bf16.msra.mxu0 %v776_v2  ;;  %p836_p10 = scmp.ne.s32.totalorder %s639_s5, %s835_s6  ;;  %p841_p12 = scmp.lt.s32.totalorder %s835_s6, %s835_s6 }
  0x25   :  { %706 = vmatprep.subr.bf16.mxu0 %v867_v0 }
  0x26   :  { %p842_p13 = por %p841_p12, %p840_p11 }
  0x27   :  { %697 = vmatmul.mubr.msk.bf16.vlgmr.msra.gmra.mxu0 %vm67_vm1, %v46_v5 }
  0x28   :  { %708 = vmatprep.mubr.msk.bf16.mxu0 %vm868_vm0, %v867_v0  ;;  %p843_p0 = pnand %p842_p13, %p836_p10 }
  0xe7   :  { %v105_v6 = vpop.f32.mrf.mxu0 }
  0xe8   :  { %v917_v7 = vpack.c.bf16 %v105_v6, %v105_v6 }
  0xe9   :  { %v698_v8 = vpop.f32.mrf.mxu0 }
  0xea   :  { %118 = vrot.lane.b32.xlu0 %v917_v7, %s869_s0 }
  0xeb   :  { %v108_v9 = vpop.f32.mrf.mxu0 }
  0xec   :  { %v920_v10 = vpack.c.bf16 %v108_v9, %v108_v9 }
  0xed   :  { %v699_v11 = vpop.f32.mrf.mxu0 }
  0xee   :  { %167 = vrot.lane.b32.xlu0 %v920_v10, %s869_s0 }
 0x15c   :  { %v119_v12 = vpop.permute.xlu0 %118 }
 0x15d   :  { %v125_v13 = vsel %vm120_vm2, %v119_v12, 0 }
 0x15e   :  { %701 = vmatpush3.bf16.xpose.msra.mxu1 %v125_v13 }
 0x15f   :  { %712 = vmatprep.subr.bf16.mxu1 %v867_v0 }
 0x160   :  { %v168_v14 = vpop.permute.xlu0 %167 }
 0x161   :  { %v173_v15 = vsel %vm120_vm2, %v168_v14, 0 }
 0x162   :  { %707 = vmatpush3.bf16.xpose.msra.mxu0 %v173_v15 }
 0x163   :  { %718 = vmatprep.subr.bf16.mxu0 %v867_v0 }
 0x165   :  { %703 = vmatmul.mubr.msk.bf16.vlgmr.msra.gmra.mxu1 %vm120_vm2, %v917_v7 }
 0x166   :  { %714 = vmatprep.mubr.msk.bf16.mxu1 %vm868_vm0, %v867_v0 }
 0x169   :  { %709 = vmatmul.mubr.msk.bf16.vlgmr.msra.gmra.mxu0 %vm120_vm2, %v920_v10 }
 0x16a   :  { %720 = vmatprep.mubr.msk.bf16.mxu0 %vm868_vm0, %v867_v0 }
 0x225   :  { %v161_v16 = vpop.f32.mrf.mxu1 }
 0x226   :  { %v216_v17 = vsel %vm215_vm3, %v161_v16, -inf }
 0x227   :  { %217 = vmax.xlane.f32.xlu1 %v216_v17  ;;  %v704_v18 = vpop.f32.mrf.mxu1 }
 0x229   :  { %v164_v19 = vpop.f32.mrf.mxu1  ;;  %v209_v20 = vpop.f32.mrf.mxu0 }
 0x22a   :  { %v219_v21 = vsel %vm215_vm3, %v209_v20, -inf }
 0x22b   :  { %v705_v22 = vpop.f32.mrf.mxu1  ;;  %220 = vmax.xlane.f32.xlu1 %v219_v21  ;;  %v710_v23 = vpop.f32.mrf.mxu0 }
 0x22d   :  { %v212_v24 = vpop.f32.mrf.mxu0 }
 0x22f   :  { %v711_v25 = vpop.f32.mrf.mxu0 }
 0x23c   :  { %240 = vrot.lane.b32.xlu1 %v917_v7, %s865_s22 }
 0x240   :  { %289 = vrot.lane.b32.xlu1 %v920_v10, %s865_s22 }
 0x244   :  { %339 = vrot.lane.b32.xlu1 %v917_v7, %s870_s1 }
 0x2b0   :  { %v218_v26 = vpop.xlane.xlu1 %217 }
 0x2b1   :  { %v222_v27 = vsub.f32 %v161_v16, %v218_v26 }
 0x2b3   :  { %v224_v28 = vmul.f32 1.442695, %v222_v27 }
 0x2b4   :  { %v221_v29 = vpop.xlane.xlu1 %220 }
 0x2b5   :  { %779 = vpow2.f32 %v224_v28  ;;  %v223_v30 = vsub.f32 %v209_v20, %v221_v29 }
 0x2b7   :  { %v226_v31 = vmul.f32 1.442695, %v223_v30 }
 0x2b8   :  { %v241_v32 = vpop.permute.xlu1 %240 }
 0x2b9   :  { %781 = vpow2.f32 %v226_v31  ;;  %v247_v33 = vsel %vm245_vm4, %v241_v32, 0  ;;  %v777_v31 = vld [vmem:[#allocation5 + $0x18] sm:$0xff]   ;;  %v778_v32 = vld [vmem:[#allocation5 + $0x10] sm:$0xff]  }
 0x2ba   :  { %713 = vmatpush3.bf16.msra.mxu1 %v247_v33 }
 0x2bb   :  { %724 = vmatprep.subr.bf16.mxu1 %v867_v0 }
 0x2bc   :  { %v290_v34 = vpop.permute.xlu1 %289 }
 0x2bd   :  { %v295_v35 = vsel %vm245_vm4, %v290_v34, 0 }
 0x2be   :  { %719 = vmatpush3.bf16.msra.mxu0 %v295_v35 }
 0x2bf   :  { %730 = vmatprep.subr.bf16.mxu0 %v867_v0 }
 0x2c0   :  { %v340_v40 = vpop.permute.xlu1 %339 }
 0x2c1   :  { %v345_v47 = vsel %vm120_vm2, %v340_v40, 0 }
 0x2c2   :  { %v780_v36 = vpop.eup %779 }
 0x2c3   :  { %v228_v37 = vsel %vm215_vm3, %v780_v36, 0.0 }
 0x2c4   :  { %229 = vadd.xlane.f32.xlu0 %v228_v37 }
 0x2c6   :  { %v782_v38 = vpop.eup %781 }
 0x2c7   :  { %v231_v39 = vsel %vm215_vm3, %v782_v38, 0.0 }
 0x2c8   :  { %232 = vadd.xlane.f32.xlu1 %v231_v39 }
 0x2d9   :  { %389 = vrot.lane.b32.xlu1 %v920_v10, %s870_s1 }
 0x2da   :  { %337 = vrot.lane.b32.xlu0 %v917_v7, %s871_s26 }
 0x2dd   :  { %387 = vrot.lane.b32.xlu1 %v920_v10, %s871_s26 }
 0x34d   :  { %v230_v41 = vpop.xlane.xlu0 %229 }
 0x34e   :  { %783 = vrcp.f32 %v230_v41 }
 0x351   :  { %v233_v42 = vpop.xlane.xlu1 %232  ;;  %v338_v52 = vpop.permute.xlu0 %337 }
 0x352   :  { %785 = vrcp.f32 %v233_v42 }
 0x355   :  { %v390_v49 = vpop.permute.xlu1 %389 }
 0x356   :  { %v395_v51 = vsel %vm120_vm2, %v390_v49, 0 }
 0x359   :  { %v388_v53 = vpop.permute.xlu1 %387 }
 0x35b   :  { %v784_v43 = vpop.eup %783 }
 0x35c   :  { %v236_v44 = vmul.f32 %v784_v43, %v780_v36 }
 0x35e   :  { %v238_v45 = vpack.c.bf16 %v236_v44, %v236_v44 }
 0x35f   :  { %v786_v46 = vpop.eup %785 }
 0x360   :  { %715 = vmatmul.mubr.msk.bf16.vlgmr.msra.gmra.mxu1 %vm215_vm3, %v238_v45  ;;  %v237_v48 = vmul.f32 %v786_v46, %v782_v38 }
 0x361   :  { %725 = vmatpush3.bf16.xpose.msra.mxu1 %v345_v47  ;;  %726 = vmatprep.mubr.msk.bf16.mxu1 %vm868_vm0, %v867_v0  ;;  %v664_v47 = vld [vmem:[%s1003_s2] ss:$0 sm:$0xff] }
 0x362   :  { %v239_v50 = vpack.c.bf16 %v237_v48, %v237_v48  ;;  %736 = vmatprep.subr.bf16.mxu1 %v867_v0 }
 0x364   :  { %721 = vmatmul.mubr.msk.bf16.vlgmr.msra.gmra.mxu0 %vm215_vm3, %v239_v50 }
 0x365   :  { %731 = vmatpush3.bf16.xpose.msra.mxu0 %v395_v51  ;;  %732 = vmatprep.mubr.msk.bf16.mxu0 %vm868_vm0, %v867_v0 }
 0x366   :  { %742 = vmatprep.subr.bf16.mxu0 %v867_v0 }
 0x368   :  { %727 = vmatmul.mubr.msk.bf16.vlgmr.msra.gmra.mxu1 %vm120_vm2, %v338_v52 }
 0x369   :  { %738 = vmatprep.mubr.msk.bf16.mxu1 %vm868_vm0, %v867_v0 }
 0x36c   :  { %733 = vmatmul.mubr.msk.bf16.vlgmr.msra.gmra.mxu0 %vm120_vm2, %v388_v53 }
 0x36d   :  { %744 = vmatprep.mubr.msk.bf16.mxu0 %vm868_vm0, %v867_v0 }
 0x420   :  { %v967_v54 = vpop.f32.mrf.mxu1 }
 0x422   :  { %v716_v55 = vpop.f32.mrf.mxu1 }
 0x424   :  { %v286_v56 = vpop.f32.mrf.mxu1  ;;  %v969_v57 = vpop.f32.mrf.mxu0 }
 0x426   :  { %v717_v58 = vpop.f32.mrf.mxu1  ;;  %v722_v59 = vpop.f32.mrf.mxu0 }
 0x428   :  { %v334_v60 = vpop.f32.mrf.mxu0  ;;  %v381_v61 = vpop.f32.mrf.mxu1 }
 0x429   :  { %v437_v62 = vsel %vm215_vm3, %v381_v61, -inf }
 0x42a   :  { %438 = vmax.xlane.f32.xlu1 %v437_v62  ;;  %v723_v63 = vpop.f32.mrf.mxu0  ;;  %v728_v1 = vpop.f32.mrf.mxu1 }
 0x42c   :  { %v384_v2 = vpop.f32.mrf.mxu1  ;;  %v431_v3 = vpop.f32.mrf.mxu0 }
 0x42d   :  { %v440_v4 = vsel %vm215_vm3, %v431_v3, -inf }
 0x42e   :  { %v729_v5 = vpop.f32.mrf.mxu1  ;;  %441 = vmax.xlane.f32.xlu0 %v440_v4  ;;  %v734_v6 = vpop.f32.mrf.mxu0 }
 0x430   :  { %v434_v8 = vpop.f32.mrf.mxu0 }
 0x432   :  { %v735_v9 = vpop.f32.mrf.mxu0 }
 0x444   :  { %509 = vrot.lane.b32.xlu0 %v920_v10, %s872_s27 }
 0x4b3   :  { %v439_v11 = vpop.xlane.xlu1 %438 }
 0x4b4   :  { %v443_v12 = vsub.f32 %v381_v61, %v439_v11 }
 0x4b6   :  { %v445_v13 = vmul.f32 1.442695, %v443_v12 }
 0x4b7   :  { %v442_v14 = vpop.xlane.xlu0 %441 }
 0x4b8   :  { %787 = vpow2.f32 %v445_v13  ;;  %v444_v15 = vsub.f32 %v431_v3, %v442_v14 }
 0x4ba   :  { %v447_v16 = vmul.f32 1.442695, %v444_v15 }
 0x4bb   :  { %v510_v17 = vpop.permute.xlu0 %509 }
 0x4bc   :  { %789 = vpow2.f32 %v447_v16  ;;  %v515_v18 = vsel %vm245_vm4, %v510_v17, 0 }
 0x4bd   :  { %743 = vmatpush3.bf16.msra.mxu0 %v515_v18 }
 0x4c5   :  { %v788_v19 = vpop.eup %787 }
 0x4c6   :  { %v449_v20 = vsel %vm215_vm3, %v788_v19, 0.0 }
 0x4c7   :  { %450 = vadd.xlane.f32.xlu1 %v449_v20 }
 0x4c9   :  { %v790_v21 = vpop.eup %789 }
 0x4ca   :  { %v452_v22 = vsel %vm215_vm3, %v790_v21, 0.0 }
 0x4cb   :  { %453 = vadd.xlane.f32.xlu1 %v452_v22 }
 0x4dc   :  { %461 = vrot.lane.b32.xlu1 %v917_v7, %s872_s27 }
 0x550   :  { %v451_v10 = vpop.xlane.xlu1 %450 }
 0x551   :  { %791 = vrcp.f32 %v451_v10 }
 0x554   :  { %v454_v23 = vpop.xlane.xlu1 %453 }
 0x555   :  { %793 = vrcp.f32 %v454_v23 }
 0x558   :  { %v462_v24 = vpop.permute.xlu1 %461 }
 0x559   :  { %v467_v25 = vsel %vm245_vm4, %v462_v24, 0 }
 0x55a   :  { %737 = vmatpush3.bf16.msra.mxu1 %v467_v25 }
 0x55b   :  { %748 = vmatprep.subr.bf16.mxu1 %v867_v0 }
 0x55e   :  { %v792_v26 = vpop.eup %791 }
 0x55f   :  { %v457_v27 = vmul.f32 %v792_v26, %v788_v19 }
 0x561   :  { %v459_v28 = vpack.c.bf16 %v457_v27, %v457_v27 }
 0x562   :  { %v794_v29 = vpop.eup %793 }
 0x563   :  { %739 = vmatmul.mubr.msk.bf16.vlgmr.msra.gmra.mxu1 %vm215_vm3, %v459_v28  ;;  %v458_v30 = vmul.f32 %v794_v29, %v790_v21 }
 0x564   :  { %752 = vmatprep.mubr.msk.bf16.mxu1 %vm868_vm0, %v867_v0  ;;  %749 = vmatpush3.bf16.msra.mxu1 %v777_v31 }
 0x565   :  { %v460_v7 = vpack.c.bf16 %v458_v30, %v458_v30  ;;  %750 = vmatprep.subr.bf16.mxu1 %v867_v0 }
 0x567   :  { %745 = vmatmul.mubr.msk.bf16.vlgmr.msra.gmra.mxu0 %vm215_vm3, %v460_v7 }
 0x568   :  { %751 = vmatpush3.bf16.msra.mxu1 %v778_v32 }
 0x623   :  { %v503_v33 = vpop.f32.mrf.mxu1 }
 0x625   :  { %v740_v34 = vpop.f32.mrf.mxu1 }
 0x627   :  { %v506_v35 = vpop.f32.mrf.mxu1  ;;  %v551_v36 = vpop.f32.mrf.mxu0 }
 0x628   :  { %v770_v37 = vpack.i.bf16 %v551_v36, %v503_v33 }
 0x629   :  { %v741_v38 = vpop.f32.mrf.mxu1  ;;  %v746_v39 = vpop.f32.mrf.mxu0 }
 0x62a   :  { %771 = vrot.lane.b32.xlu1 %v770_v37, %s873_s28 }
 0x62b   :  { %v554_v40 = vpop.f32.mrf.mxu0 }
 0x62d   :  { %v747_v41 = vpop.f32.mrf.mxu0 }
 0x69c   :  { %v772_v42 = vpop.permute.xlu1 %771 }
 0x69d   :  { %v774_v43 = vunpack.i.h.bf16 %v772_v42  ;;  %v773_v44 = vunpack.i.l.bf16 %v772_v42 }
 0x69f   :  { %v566_v45 = vsel %vm120_vm2, %v969_v57, %v774_v43  ;;  %v565_v0 = vsel %vm120_vm2, %v967_v54, %v773_v44 }
 0x6a0   :  { %v567_v46 = vpack.c.bf16 %v566_v45, %v565_v0 }
 0x6a2   :  { %753 = vmatmul.mubr.msk.bf16.vlgmr.msra.gmra.mxu1 %vm67_vm1, %v567_v46 }
 0x762   :  { %v624_v48 = vpop.f32.mrf.mxu1 }
 0x763   :  { %v625_v49 = vadd.f32 %v664_v47, %v624_v48 }
 0x764   :  { %v754_v50 = vpop.f32.mrf.mxu1 }
 0x765   :  { %631 = vst.msk [vmem:[#allocation7] sm:$0xff] %vm67_vm1, %v625_v49 }
 0x766   :  { %v627_v51 = vpop.f32.mrf.mxu1 }
 0x767   :  { %v628_v52 = vadd.f32 %v664_v47, %v627_v51 }
 0x768   :  { %v755_v53 = vpop.f32.mrf.mxu1 }
 0x769   :  { %632 = vst.msk [vmem:[#allocation7 + $0x8] sm:$0xff] %vm67_vm1, %v628_v52 }
 0x76a   :  { %846 = shalt.err (!%p843_p0)
}
 0x76b   :  { %644 = dma.vmem_to_hbm [thread:$0]  %s639_s5, 256, %s1004_s3, [#allocation4], %s862_s15, %s862_s15, %s863_s16  }
 0x76c   :  { %859 = dma.done.wait [#allocation4], 256  }
 0x76d   :  { %860 = vsyncadd [#allocation4], 4294967040 }
 0x76e   :  { %648 = vsyncpa [#allocation3], 1 }
 0x76f   :  { %649 = vsyncpa [#allocation6], 1 }
 0x770   :  { %650 = vsyncpa [#allocation4], 1 }

</bundles_post_ra>
